<compile_context>
chip_gen: v7x
topology: tpu7x:2x2x1
jax: 0.10.0
libtpu: 0.0.40
codegen_flags: <defaults>
</compile_context>

<pallas_src>
import functools

import jax
import jax.numpy as jnp
from jax import lax
from jax.experimental import pallas as pl
from jax.experimental.pallas import tpu as pltpu

OUT_LANES = 128                      # lane-dense partial-stat output width
TARGET_STEP_BYTES = 4 * 1024 * 1024  # input bytes (both tensors) per grid step
MAX_CHUNK_ELEMS = 4096               # ~4 f32 vregs per live chunk array
_F32_EPS = 1.1920929e-07             # torch.finfo(torch.float32).eps


def _sisnr_stats_kernel(x_ref, t_ref, o_ref, *, total_t: int, block_t: int,
                        chunk: int):
    """One grid step: partial sums of (x, t, x*t, x*x, t*t) over a
    (rows, block_t) chunk of the inputs, written as one lane-dense
    (rows, OUT_LANES) tile. The block is consumed in `chunk`-lane pieces."""
    j = pl.program_id(0)
    rows = x_ref.shape[0]
    n_full = block_t // chunk
    tail = block_t - n_full * chunk   # nonzero only for a full-extent block

    def run(masked: bool):
        def load(start, width):
            x = x_ref[:, pl.ds(start, width)].astype(jnp.float32)
            t = t_ref[:, pl.ds(start, width)].astype(jnp.float32)
            if masked:
                col = (j * block_t + start
                       + lax.broadcasted_iota(jnp.int32, (rows, width), 1))
                valid = col < total_t
                x = jnp.where(valid, x, 0.0)
                t = jnp.where(valid, t, 0.0)
            return x, t

        sx = jnp.zeros((rows, 1), jnp.float32)
        st, sxt, sxx, stt = sx, sx, sx, sx

        if n_full > 0:
            def body(c, carry):
                ax, at, axt, axx, att = carry
                start = pl.multiple_of(c * chunk, chunk)
                x, t = load(start, chunk)
                return (ax + x, at + t, axt + x * t, axx + x * x, att + t * t)

            zero = jnp.zeros((rows, chunk), jnp.float32)
            ax, at, axt, axx, att = lax.fori_loop(
                0, n_full, body, (zero, zero, zero, zero, zero),
                unroll=min(n_full, 4))
            sx = sx + jnp.sum(ax, axis=-1, keepdims=True)
            st = st + jnp.sum(at, axis=-1, keepdims=True)
            sxt = sxt + jnp.sum(axt, axis=-1, keepdims=True)
            sxx = sxx + jnp.sum(axx, axis=-1, keepdims=True)
            stt = stt + jnp.sum(att, axis=-1, keepdims=True)

        if tail > 0:
            # Static-size remainder chunk (only when block covers the full
            # row, i.e. no grid-level padding -> masked is False here).
            x, t = load(n_full * chunk, tail)
            sx = sx + jnp.sum(x, axis=-1, keepdims=True)
            st = st + jnp.sum(t, axis=-1, keepdims=True)
            sxt = sxt + jnp.sum(x * t, axis=-1, keepdims=True)
            sxx = sxx + jnp.sum(x * x, axis=-1, keepdims=True)
            stt = stt + jnp.sum(t * t, axis=-1, keepdims=True)

        lane = lax.broadcasted_iota(jnp.int32, (rows, OUT_LANES), 1)
        tile = (jnp.where(lane == 0, sx, 0.0)
                + jnp.where(lane == 1, st, 0.0)
                + jnp.where(lane == 2, sxt, 0.0)
                + jnp.where(lane == 3, sxx, 0.0)
                + jnp.where(lane == 4, stt, 0.0))
        o_ref[0] = tile                       # single full-tile (128-lane) store

    if total_t % block_t == 0:
        run(masked=False)                     # no ragged tail anywhere
    else:
        last = pl.num_programs(0) - 1

        @pl.when(j < last)
        def _():
            run(masked=False)                 # interior blocks: no mask cost

        @pl.when(j == last)
        def _():
            run(masked=True)                  # only the tail block pays masks


def _choose_row_split(B: int, T: int) -> int:
    """Pick r in {8,4,2,1} dividing T so B*r fills the 8 sublanes."""
    if B >= 8:
        return 1
    for cand in (8, 4, 2):
        if T % cand == 0:
            return cand
    return 1


def _sisnr_stats(x2d: jax.Array, t2d: jax.Array) -> jax.Array:
    """x2d, t2d: (B, T) arrays (any float dtype).
    Returns (B, 5) f32 row sums: [Sx, St, Sxt, Sxx, Stt]."""
    B, T = x2d.shape
    r = _choose_row_split(B, T)
    rows, Tp = B * r, T // r
    x2 = x2d.reshape(rows, Tp)                # free row-major reshape
    t2 = t2d.reshape(rows, Tp)

    # Compute-chunk width (lanes): ~MAX_CHUNK_ELEMS elements per live chunk
    # array keeps vreg pressure bounded inside the fori_loop.
    chunk = max(128, min(2048, (MAX_CHUNK_ELEMS // rows) // 128 * 128))

    # Grid-step width (lanes): each step moves ~TARGET_STEP_BYTES from HBM
    # (double-buffered input footprint ~2x that -> v5e/v7x VMEM-safe).
    bytes_per_col = rows * (x2.dtype.itemsize + t2.dtype.itemsize)
    budget = max(chunk, (TARGET_STEP_BYTES // bytes_per_col) // chunk * chunk)
    if budget >= Tp:
        if Tp >= 2 * chunk:
            # Keep >= 2 grid steps so both v7x TensorCores get work.
            block_t = pl.cdiv(pl.cdiv(Tp, 2), chunk) * chunk
        else:
            block_t = Tp                      # single full-extent block
    else:
        block_t = budget
    n_blocks = pl.cdiv(Tp, block_t)

    out = pl.pallas_call(
        functools.partial(_sisnr_stats_kernel, total_t=Tp, block_t=block_t,
                          chunk=chunk),
        out_shape=jax.ShapeDtypeStruct((n_blocks, rows, OUT_LANES),
                                       jnp.float32),
        grid_spec=pltpu.PrefetchScalarGridSpec(
            num_scalar_prefetch=0,
            grid=(n_blocks,),
            in_specs=[pl.BlockSpec((rows, block_t), lambda j: (0, j)),
                      pl.BlockSpec((rows, block_t), lambda j: (0, j))],
            out_specs=pl.BlockSpec((1, rows, OUT_LANES), lambda j: (j, 0, 0)),
        ),
        compiler_params=pltpu.CompilerParams(
            dimension_semantics=("parallel",)),
    )(x2, t2)

    stats = jnp.sum(out[..., :5], axis=0)                 # (rows, 5)
    return jnp.sum(stats.reshape(B, r, 5), axis=1)        # (B, 5)


class SISNRLoss:
    """JAX/Pallas port of the PyTorch SISNRLoss module (forward only)."""
    # TODO(synk): forward-only; a custom_vjp for the Pallas stats kernel would
    # be needed to backprop through x (target is detached in the original).

    def __call__(self, x, target):
        x = self._squeeze1(x)
        target = jax.lax.stop_gradient(self._squeeze1(target))  # .detach()

        T = x.shape[-1]
        x2 = x.reshape(-1, T)
        t2 = target.reshape(-1, T)

        stats = _sisnr_stats(x2, t2)                    # (B, 5) f32
        sx, st, sxt, sxx, stt = (stats[:, k] for k in range(5))

        n = jnp.float32(T)
        eps = jnp.float32(_F32_EPS)
        # NOTE: single-pass centered stats (Sxt - Sx*St/n, ...) trade a second
        # HBM pass for some cancellation risk on strongly DC-offset signals.
        dot = sxt - sx * st / n            # sum(xc * tc)
        tt = stt - st * st / n             # sum(tc ** 2)
        xx = sxx - sx * sx / n             # sum(xc ** 2)
        alpha = (dot + eps) / (tt + eps)
        num = alpha * alpha * tt                         # sum((alpha*tc)^2)
        den = jnp.maximum(num - 2.0 * alpha * dot + xx, 0.0)  # sum(noise^2)>=0
        si_snr = 10.0 * jnp.log10((num + eps) / (den + eps))
        return -jnp.mean(si_snr)

    @staticmethod
    def _squeeze1(a):
        # torch .squeeze(1): no-op if dim 1 is not size 1.
        return jnp.squeeze(a, axis=1) if a.ndim >= 2 and a.shape[1] == 1 else a


def _reference_sisnr_loss(x, target):
    """Pure-jnp elementwise reference mirroring torchmetrics SI-SNR."""
    def sq1(a):
        return jnp.squeeze(a, axis=1) if a.ndim >= 2 and a.shape[1] == 1 else a
    x = sq1(jnp.asarray(x, jnp.float32))
    t = sq1(jnp.asarray(target, jnp.float32))
    T = x.shape[-1]
    x = x.reshape(-1, T)
    t = t.reshape(-1, T)
    eps = jnp.float32(_F32_EPS)
    x = x - jnp.mean(x, axis=-1, keepdims=True)
    t = t - jnp.mean(t, axis=-1, keepdims=True)
    alpha = ((jnp.sum(x * t, axis=-1, keepdims=True) + eps)
             / (jnp.sum(t * t, axis=-1, keepdims=True) + eps))
    t_scaled = alpha * t
    noise = t_scaled - x
    val = ((jnp.sum(t_scaled * t_scaled, axis=-1) + eps)
           / (jnp.sum(noise * noise, axis=-1) + eps))
    return -jnp.mean(10.0 * jnp.log10(val))


if __name__ == "__main__":
    key = jax.random.PRNGKey(0)
    loss_mod = SISNRLoss()

    # Case 1: f32, B=2, T=8000 -> reshape to (16, 1000), 2 grid blocks of 512
    # lanes, interior block unmasked, ragged last block masked via pl.when.
    k1, k2 = jax.random.split(key)
    target = jax.random.normal(k1, (2, 1, 8000), jnp.float32)
    noise = jax.random.normal(k2, (2, 1, 8000), jnp.float32)
    x = target + 0.3 * noise
    loss = jax.block_until_ready(loss_mod(x, target))
    ref = _reference_sisnr_loss(x, target)
    assert jnp.allclose(loss, ref, rtol=2e-3, atol=2e-3), (loss, ref)

    # Case 2: bf16 inputs, B=3, T=1024 -> reshape to (24, 128), single
    # full-extent block, native bf16 load with in-kernel f32 cast.
    k3, k4 = jax.random.split(k2)
    target2 = jax.random.normal(k3, (3, 1, 1024), jnp.float32)
    x2 = target2 + 0.5 * jax.random.normal(k4, (3, 1, 1024), jnp.float32)
    x2_bf, t2_bf = x2.astype(jnp.bfloat16), target2.astype(jnp.bfloat16)
    loss2 = jax.block_until_ready(loss_mod(x2_bf, t2_bf))
    ref2 = _reference_sisnr_loss(x2_bf, t2_bf)
    assert jnp.allclose(loss2, ref2, rtol=2e-3, atol=2e-3), (loss2, ref2)

    # Case 3: f32, B=3, T=1000 -> reshape to (24, 125), single full-extent
    # block narrower than the compute chunk (static tail-chunk path).
    k5, k6 = jax.random.split(k4)
    target3 = jax.random.normal(k5, (3, 1, 1000), jnp.float32)
    x3 = target3 + 0.7 * jax.random.normal(k6, (3, 1, 1000), jnp.float32)
    loss3 = jax.block_until_ready(loss_mod(x3, target3))
    ref3 = _reference_sisnr_loss(x3, target3)
    assert jnp.allclose(loss3, ref3, rtol=2e-3, atol=2e-3), (loss3, ref3)

    print("KERNEL_OK")
</pallas_src>

<mosaic_0001>
module attributes {stable_mosaic.version = 11 : i64} {
  func.func @_sisnr_stats_kernel(%arg0: i32, %arg1: memref<16x512xf32, #tpu.memory_space<vmem>>, %arg2: memref<16x512xf32, #tpu.memory_space<vmem>>, %arg3: memref<1x16x128xf32, #tpu.memory_space<vmem>>) attributes {dimension_semantics = [#tpu.dimension_semantics<parallel>], iteration_bounds = array<i64: 2>, scalar_prefetch = 0 : i64, scratch_operands = 0 : i64, tpu.core_type = #tpu.core_type<tc>, window_params = [{transform_indices = @transform_0, window_bounds = array<i64: 16, 512>}, {transform_indices = @transform_1, window_bounds = array<i64: 16, 512>}, {transform_indices = @transform_2, window_bounds = array<i64: 1, 16, 128>}]} {
    %c1_i32 = arith.constant 1 : i32
    %0 = arith.cmpi slt, %arg0, %c1_i32 : i32
    %1 = arith.extui %0 : i1 to i32
    %c0_i32 = arith.constant 0 : i32
    %2 = arith.cmpi ne, %1, %c0_i32 : i32
    scf.if %2 {
      %cst = arith.constant 0.000000e+00 : f32
      %6 = vector.broadcast %cst : f32 to vector<16x1xf32>
      %cst_2 = arith.constant 0.000000e+00 : f32
      %7 = vector.broadcast %cst_2 : f32 to vector<16x256xf32>
      %c0_i32_3 = arith.constant 0 : i32
      %c256_i32 = arith.constant 256 : i32
      %8 = arith.muli %c0_i32_3, %c256_i32 : i32
      %9 = tpu.assume_multiple %8, 256 : i32
      %c0 = arith.constant 0 : index
      %10 = arith.index_cast %9 : i32 to index
      %11 = vector.load %arg1[%c0, %10] : memref<16x512xf32, #tpu.memory_space<vmem>>, vector<16x256xf32>
      %c0_4 = arith.constant 0 : index
      %12 = arith.index_cast %9 : i32 to index
      %13 = vector.load %arg2[%c0_4, %12] : memref<16x512xf32, #tpu.memory_space<vmem>>, vector<16x256xf32>
      %14 = arith.addf %7, %11 : vector<16x256xf32>
      %15 = arith.addf %7, %13 : vector<16x256xf32>
      %16 = arith.mulf %11, %13 : vector<16x256xf32>
      %17 = arith.addf %7, %16 : vector<16x256xf32>
      %18 = arith.mulf %11, %11 : vector<16x256xf32>
      %19 = arith.addf %7, %18 : vector<16x256xf32>
      %20 = arith.mulf %13, %13 : vector<16x256xf32>
      %21 = arith.addf %7, %20 : vector<16x256xf32>
      %c1_i32_5 = arith.constant 1 : i32
      %c256_i32_6 = arith.constant 256 : i32
      %22 = arith.muli %c1_i32_5, %c256_i32_6 : i32
      %23 = tpu.assume_multiple %22, 256 : i32
      %c0_7 = arith.constant 0 : index
      %24 = arith.index_cast %23 : i32 to index
      %25 = vector.load %arg1[%c0_7, %24] : memref<16x512xf32, #tpu.memory_space<vmem>>, vector<16x256xf32>
      %c0_8 = arith.constant 0 : index
      %26 = arith.index_cast %23 : i32 to index
      %27 = vector.load %arg2[%c0_8, %26] : memref<16x512xf32, #tpu.memory_space<vmem>>, vector<16x256xf32>
      %28 = arith.addf %14, %25 : vector<16x256xf32>
      %29 = arith.addf %15, %27 : vector<16x256xf32>
      %30 = arith.mulf %25, %27 : vector<16x256xf32>
      %31 = arith.addf %17, %30 : vector<16x256xf32>
      %32 = arith.mulf %25, %25 : vector<16x256xf32>
      %33 = arith.addf %19, %32 : vector<16x256xf32>
      %34 = arith.mulf %27, %27 : vector<16x256xf32>
      %35 = arith.addf %21, %34 : vector<16x256xf32>
      %c2_i32 = arith.constant 2 : i32
      %cst_9 = arith.constant dense<0.000000e+00> : vector<16xf32>
      %36 = vector.multi_reduction <add>, %28, %cst_9 [1] : vector<16x256xf32> to vector<16xf32>
      %37 = vector.shape_cast %36 : vector<16xf32> to vector<16x1xf32>
      %38 = arith.addf %6, %37 : vector<16x1xf32>
      %cst_10 = arith.constant dense<0.000000e+00> : vector<16xf32>
      %39 = vector.multi_reduction <add>, %29, %cst_10 [1] : vector<16x256xf32> to vector<16xf32>
      %40 = vector.shape_cast %39 : vector<16xf32> to vector<16x1xf32>
      %41 = arith.addf %6, %40 : vector<16x1xf32>
      %cst_11 = arith.constant dense<0.000000e+00> : vector<16xf32>
      %42 = vector.multi_reduction <add>, %31, %cst_11 [1] : vector<16x256xf32> to vector<16xf32>
      %43 = vector.shape_cast %42 : vector<16xf32> to vector<16x1xf32>
      %44 = arith.addf %6, %43 : vector<16x1xf32>
      %cst_12 = arith.constant dense<0.000000e+00> : vector<16xf32>
      %45 = vector.multi_reduction <add>, %33, %cst_12 [1] : vector<16x256xf32> to vector<16xf32>
      %46 = vector.shape_cast %45 : vector<16xf32> to vector<16x1xf32>
      %47 = arith.addf %6, %46 : vector<16x1xf32>
      %cst_13 = arith.constant dense<0.000000e+00> : vector<16xf32>
      %48 = vector.multi_reduction <add>, %35, %cst_13 [1] : vector<16x256xf32> to vector<16xf32>
      %49 = vector.shape_cast %48 : vector<16xf32> to vector<16x1xf32>
      %50 = arith.addf %6, %49 : vector<16x1xf32>
      %51 = tpu.iota {dimensions = array<i32: 1>} : vector<16x128xi32>
      %c0_i32_14 = arith.constant 0 : i32
      %52 = vector.broadcast %c0_i32_14 : i32 to vector<16x128xi32>
      %53 = arith.cmpi eq, %51, %52 : vector<16x128xi32>
      %cst_15 = arith.constant 0.000000e+00 : f32
      %54 = vector.shape_cast %38 : vector<16x1xf32> to vector<16x1xf32>
      %55 = vector.broadcast %54 : vector<16x1xf32> to vector<16x128xf32>
      %56 = vector.broadcast %cst_15 : f32 to vector<16x128xf32>
      %57 = arith.select %53, %55, %56 : vector<16x128xi1>, vector<16x128xf32>
      %c1_i32_16 = arith.constant 1 : i32
      %58 = vector.broadcast %c1_i32_16 : i32 to vector<16x128xi32>
      %59 = arith.cmpi eq, %51, %58 : vector<16x128xi32>
      %cst_17 = arith.constant 0.000000e+00 : f32
      %60 = vector.shape_cast %41 : vector<16x1xf32> to vector<16x1xf32>
      %61 = vector.broadcast %60 : vector<16x1xf32> to vector<16x128xf32>
      %62 = vector.broadcast %cst_17 : f32 to vector<16x128xf32>
      %63 = arith.select %59, %61, %62 : vector<16x128xi1>, vector<16x128xf32>
      %64 = arith.addf %57, %63 : vector<16x128xf32>
      %c2_i32_18 = arith.constant 2 : i32
      %65 = vector.broadcast %c2_i32_18 : i32 to vector<16x128xi32>
      %66 = arith.cmpi eq, %51, %65 : vector<16x128xi32>
      %cst_19 = arith.constant 0.000000e+00 : f32
      %67 = vector.shape_cast %44 : vector<16x1xf32> to vector<16x1xf32>
      %68 = vector.broadcast %67 : vector<16x1xf32> to vector<16x128xf32>
      %69 = vector.broadcast %cst_19 : f32 to vector<16x128xf32>
      %70 = arith.select %66, %68, %69 : vector<16x128xi1>, vector<16x128xf32>
      %71 = arith.addf %64, %70 : vector<16x128xf32>
      %c3_i32 = arith.constant 3 : i32
      %72 = vector.broadcast %c3_i32 : i32 to vector<16x128xi32>
      %73 = arith.cmpi eq, %51, %72 : vector<16x128xi32>
      %cst_20 = arith.constant 0.000000e+00 : f32
      %74 = vector.shape_cast %47 : vector<16x1xf32> to vector<16x1xf32>
      %75 = vector.broadcast %74 : vector<16x1xf32> to vector<16x128xf32>
      %76 = vector.broadcast %cst_20 : f32 to vector<16x128xf32>
      %77 = arith.select %73, %75, %76 : vector<16x128xi1>, vector<16x128xf32>
      %78 = arith.addf %71, %77 : vector<16x128xf32>
      %c4_i32 = arith.constant 4 : i32
      %79 = vector.broadcast %c4_i32 : i32 to vector<16x128xi32>
      %80 = arith.cmpi eq, %51, %79 : vector<16x128xi32>
      %cst_21 = arith.constant 0.000000e+00 : f32
      %81 = vector.shape_cast %50 : vector<16x1xf32> to vector<16x1xf32>
      %82 = vector.broadcast %81 : vector<16x1xf32> to vector<16x128xf32>
      %83 = vector.broadcast %cst_21 : f32 to vector<16x128xf32>
      %84 = arith.select %80, %82, %83 : vector<16x128xi1>, vector<16x128xf32>
      %85 = arith.addf %78, %84 : vector<16x128xf32>
      %c0_22 = arith.constant 0 : index
      %c0_23 = arith.constant 0 : index
      %c0_24 = arith.constant 0 : index
      %86 = vector.load %arg3[%c0_22, %c0_23, %c0_24] : memref<1x16x128xf32, #tpu.memory_space<vmem>>, vector<1x16x128xf32>
      %87 = vector.shape_cast %86 : vector<1x16x128xf32> to vector<16x128xf32>
      %88 = vector.shape_cast %85 : vector<16x128xf32> to vector<1x16x128xf32>
      tpu.vector_store %arg3[%c0_22, %c0_23, %c0_24], %88 {strides = array<i32>} : memref<1x16x128xf32, #tpu.memory_space<vmem>>, vector<1x16x128xf32>,
    } else {
    }
    %c1_i32_0 = arith.constant 1 : i32
    %3 = arith.cmpi eq, %arg0, %c1_i32_0 : i32
    %4 = arith.extui %3 : i1 to i32
    %c0_i32_1 = arith.constant 0 : i32
    %5 = arith.cmpi ne, %4, %c0_i32_1 : i32
    scf.if %5 {
      %cst = arith.constant 0.000000e+00 : f32
      %6 = vector.broadcast %cst : f32 to vector<16x1xf32>
      %cst_2 = arith.constant 0.000000e+00 : f32
      %7 = vector.broadcast %cst_2 : f32 to vector<16x256xf32>
      %c0_i32_3 = arith.constant 0 : i32
      %c256_i32 = arith.constant 256 : i32
      %8 = arith.muli %c0_i32_3, %c256_i32 : i32
      %9 = tpu.assume_multiple %8, 256 : i32
      %c0 = arith.constant 0 : index
      %10 = arith.index_cast %9 : i32 to index
      %11 = vector.load %arg1[%c0, %10] : memref<16x512xf32, #tpu.memory_space<vmem>>, vector<16x256xf32>
      %c0_4 = arith.constant 0 : index
      %12 = arith.index_cast %9 : i32 to index
      %13 = vector.load %arg2[%c0_4, %12] : memref<16x512xf32, #tpu.memory_space<vmem>>, vector<16x256xf32>
      %c512_i32 = arith.constant 512 : i32
      %14 = arith.muli %arg0, %c512_i32 : i32
      %15 = arith.addi %14, %9 : i32
      %16 = tpu.iota {dimensions = array<i32: 1>} : vector<16x256xi32>
      %17 = vector.broadcast %15 : i32 to vector<16x256xi32>
      %18 = arith.addi %17, %16 : vector<16x256xi32>
      %c1000_i32 = arith.constant 1000 : i32
      %19 = vector.broadcast %c1000_i32 : i32 to vector<16x256xi32>
      %20 = arith.cmpi slt, %18, %19 : vector<16x256xi32>
      %cst_5 = arith.constant 0.000000e+00 : f32
      %21 = vector.broadcast %cst_5 : f32 to vector<16x256xf32>
      %22 = arith.select %20, %11, %21 : vector<16x256xi1>, vector<16x256xf32>
      %cst_6 = arith.constant 0.000000e+00 : f32
      %23 = vector.broadcast %cst_6 : f32 to vector<16x256xf32>
      %24 = arith.select %20, %13, %23 : vector<16x256xi1>, vector<16x256xf32>
      %25 = arith.addf %7, %22 : vector<16x256xf32>
      %26 = arith.addf %7, %24 : vector<16x256xf32>
      %27 = arith.mulf %22, %24 : vector<16x256xf32>
      %28 = arith.addf %7, %27 : vector<16x256xf32>
      %29 = arith.mulf %22, %22 : vector<16x256xf32>
      %30 = arith.addf %7, %29 : vector<16x256xf32>
      %31 = arith.mulf %24, %24 : vector<16x256xf32>
      %32 = arith.addf %7, %31 : vector<16x256xf32>
      %c1_i32_7 = arith.constant 1 : i32
      %c256_i32_8 = arith.constant 256 : i32
      %33 = arith.muli %c1_i32_7, %c256_i32_8 : i32
      %34 = tpu.assume_multiple %33, 256 : i32
      %c0_9 = arith.constant 0 : index
      %35 = arith.index_cast %34 : i32 to index
      %36 = vector.load %arg1[%c0_9, %35] : memref<16x512xf32, #tpu.memory_space<vmem>>, vector<16x256xf32>
      %c0_10 = arith.constant 0 : index
      %37 = arith.index_cast %34 : i32 to index
      %38 = vector.load %arg2[%c0_10, %37] : memref<16x512xf32, #tpu.memory_space<vmem>>, vector<16x256xf32>
      %c512_i32_11 = arith.constant 512 : i32
      %39 = arith.muli %arg0, %c512_i32_11 : i32
      %40 = arith.addi %39, %34 : i32
      %41 = tpu.iota {dimensions = array<i32: 1>} : vector<16x256xi32>
      %42 = vector.broadcast %40 : i32 to vector<16x256xi32>
      %43 = arith.addi %42, %41 : vector<16x256xi32>
      %c1000_i32_12 = arith.constant 1000 : i32
      %44 = vector.broadcast %c1000_i32_12 : i32 to vector<16x256xi32>
      %45 = arith.cmpi slt, %43, %44 : vector<16x256xi32>
      %cst_13 = arith.constant 0.000000e+00 : f32
      %46 = vector.broadcast %cst_13 : f32 to vector<16x256xf32>
      %47 = arith.select %45, %36, %46 : vector<16x256xi1>, vector<16x256xf32>
      %cst_14 = arith.constant 0.000000e+00 : f32
      %48 = vector.broadcast %cst_14 : f32 to vector<16x256xf32>
      %49 = arith.select %45, %38, %48 : vector<16x256xi1>, vector<16x256xf32>
      %50 = arith.addf %25, %47 : vector<16x256xf32>
      %51 = arith.addf %26, %49 : vector<16x256xf32>
      %52 = arith.mulf %47, %49 : vector<16x256xf32>
      %53 = arith.addf %28, %52 : vector<16x256xf32>
      %54 = arith.mulf %47, %47 : vector<16x256xf32>
      %55 = arith.addf %30, %54 : vector<16x256xf32>
      %56 = arith.mulf %49, %49 : vector<16x256xf32>
      %57 = arith.addf %32, %56 : vector<16x256xf32>
      %c2_i32 = arith.constant 2 : i32
      %cst_15 = arith.constant dense<0.000000e+00> : vector<16xf32>
      %58 = vector.multi_reduction <add>, %50, %cst_15 [1] : vector<16x256xf32> to vector<16xf32>
      %59 = vector.shape_cast %58 : vector<16xf32> to vector<16x1xf32>
      %60 = arith.addf %6, %59 : vector<16x1xf32>
      %cst_16 = arith.constant dense<0.000000e+00> : vector<16xf32>
      %61 = vector.multi_reduction <add>, %51, %cst_16 [1] : vector<16x256xf32> to vector<16xf32>
      %62 = vector.shape_cast %61 : vector<16xf32> to vector<16x1xf32>
      %63 = arith.addf %6, %62 : vector<16x1xf32>
      %cst_17 = arith.constant dense<0.000000e+00> : vector<16xf32>
      %64 = vector.multi_reduction <add>, %53, %cst_17 [1] : vector<16x256xf32> to vector<16xf32>
      %65 = vector.shape_cast %64 : vector<16xf32> to vector<16x1xf32>
      %66 = arith.addf %6, %65 : vector<16x1xf32>
      %cst_18 = arith.constant dense<0.000000e+00> : vector<16xf32>
      %67 = vector.multi_reduction <add>, %55, %cst_18 [1] : vector<16x256xf32> to vector<16xf32>
      %68 = vector.shape_cast %67 : vector<16xf32> to vector<16x1xf32>
      %69 = arith.addf %6, %68 : vector<16x1xf32>
      %cst_19 = arith.constant dense<0.000000e+00> : vector<16xf32>
      %70 = vector.multi_reduction <add>, %57, %cst_19 [1] : vector<16x256xf32> to vector<16xf32>
      %71 = vector.shape_cast %70 : vector<16xf32> to vector<16x1xf32>
      %72 = arith.addf %6, %71 : vector<16x1xf32>
      %73 = tpu.iota {dimensions = array<i32: 1>} : vector<16x128xi32>
      %c0_i32_20 = arith.constant 0 : i32
      %74 = vector.broadcast %c0_i32_20 : i32 to vector<16x128xi32>
      %75 = arith.cmpi eq, %73, %74 : vector<16x128xi32>
      %cst_21 = arith.constant 0.000000e+00 : f32
      %76 = vector.shape_cast %60 : vector<16x1xf32> to vector<16x1xf32>
      %77 = vector.broadcast %76 : vector<16x1xf32> to vector<16x128xf32>
      %78 = vector.broadcast %cst_21 : f32 to vector<16x128xf32>
      %79 = arith.select %75, %77, %78 : vector<16x128xi1>, vector<16x128xf32>
      %c1_i32_22 = arith.constant 1 : i32
      %80 = vector.broadcast %c1_i32_22 : i32 to vector<16x128xi32>
      %81 = arith.cmpi eq, %73, %80 : vector<16x128xi32>
      %cst_23 = arith.constant 0.000000e+00 : f32
      %82 = vector.shape_cast %63 : vector<16x1xf32> to vector<16x1xf32>
      %83 = vector.broadcast %82 : vector<16x1xf32> to vector<16x128xf32>
      %84 = vector.broadcast %cst_23 : f32 to vector<16x128xf32>
      %85 = arith.select %81, %83, %84 : vector<16x128xi1>, vector<16x128xf32>
      %86 = arith.addf %79, %85 : vector<16x128xf32>
      %c2_i32_24 = arith.constant 2 : i32
      %87 = vector.broadcast %c2_i32_24 : i32 to vector<16x128xi32>
      %88 = arith.cmpi eq, %73, %87 : vector<16x128xi32>
      %cst_25 = arith.constant 0.000000e+00 : f32
      %89 = vector.shape_cast %66 : vector<16x1xf32> to vector<16x1xf32>
      %90 = vector.broadcast %89 : vector<16x1xf32> to vector<16x128xf32>
      %91 = vector.broadcast %cst_25 : f32 to vector<16x128xf32>
      %92 = arith.select %88, %90, %91 : vector<16x128xi1>, vector<16x128xf32>
      %93 = arith.addf %86, %92 : vector<16x128xf32>
      %c3_i32 = arith.constant 3 : i32
      %94 = vector.broadcast %c3_i32 : i32 to vector<16x128xi32>
      %95 = arith.cmpi eq, %73, %94 : vector<16x128xi32>
      %cst_26 = arith.constant 0.000000e+00 : f32
      %96 = vector.shape_cast %69 : vector<16x1xf32> to vector<16x1xf32>
      %97 = vector.broadcast %96 : vector<16x1xf32> to vector<16x128xf32>
      %98 = vector.broadcast %cst_26 : f32 to vector<16x128xf32>
      %99 = arith.select %95, %97, %98 : vector<16x128xi1>, vector<16x128xf32>
      %100 = arith.addf %93, %99 : vector<16x128xf32>
      %c4_i32 = arith.constant 4 : i32
      %101 = vector.broadcast %c4_i32 : i32 to vector<16x128xi32>
      %102 = arith.cmpi eq, %73, %101 : vector<16x128xi32>
      %cst_27 = arith.constant 0.000000e+00 : f32
      %103 = vector.shape_cast %72 : vector<16x1xf32> to vector<16x1xf32>
      %104 = vector.broadcast %103 : vector<16x1xf32> to vector<16x128xf32>
      %105 = vector.broadcast %cst_27 : f32 to vector<16x128xf32>
      %106 = arith.select %102, %104, %105 : vector<16x128xi1>, vector<16x128xf32>
      %107 = arith.addf %100, %106 : vector<16x128xf32>
      %c0_28 = arith.constant 0 : index
      %c0_29 = arith.constant 0 : index
      %c0_30 = arith.constant 0 : index
      %108 = vector.load %arg3[%c0_28, %c0_29, %c0_30] : memref<1x16x128xf32, #tpu.memory_space<vmem>>, vector<1x16x128xf32>
      %109 = vector.shape_cast %108 : vector<1x16x128xf32> to vector<16x128xf32>
      %110 = vector.shape_cast %107 : vector<16x128xf32> to vector<1x16x128xf32>
      tpu.vector_store %arg3[%c0_28, %c0_29, %c0_30], %110 {strides = array<i32>} : memref<1x16x128xf32, #tpu.memory_space<vmem>>, vector<1x16x128xf32>,
    } else {
    }
    return
  }
  func.func @transform_0(%arg0: i32) -> (i32, i32) {
    %c0_i32 = arith.constant 0 : i32
    %c0_i32_0 = arith.constant 0 : i32
    return %c0_i32, %arg0 : i32, i32
  }
  func.func @transform_1(%arg0: i32) -> (i32, i32) {
    %c0_i32 = arith.constant 0 : i32
    %c0_i32_0 = arith.constant 0 : i32
    return %c0_i32, %arg0 : i32, i32
  }
  func.func @transform_2(%arg0: i32) -> (i32, i32, i32) {
    %c0_i32 = arith.constant 0 : i32
    %c0_i32_0 = arith.constant 0 : i32
    %c0_i32_1 = arith.constant 0 : i32
    return %arg0, %c0_i32, %c0_i32_0 : i32, i32, i32
  }
}

</mosaic_0001>

<bundles_post_ra>
// kernel: tpu_custom_call.1
= control target key start
LH: loop header
LB: loop body
LE: loop exit
PB: predicated region body
PF: predicated region fallthrough
CT: control target
= control target key end

     0   :  { %7 = vsyncpa [#allocation3], 0  ;;  %s1232_s0 = inlined_call_operand.hbm [shape: f32[16,1000], index: 0, kind: input, shape index: {}]   ;;  %s1233_s1 = inlined_call_operand.hbm [shape: f32[16,1000], index: 1, kind: input, shape index: {}]   ;;  %s1234_s2 = inlined_call_operand.hbm [shape: f32[2,16,128], index: 2, kind: output, shape index: {}]  }
   0x1   :  { %9 = vsyncpa [#allocation3 + $0x1], 0 }
   0x2   :  { %10 = vsyncpa [#allocation6], 0 }
   0x3   :  { %12 = vsyncpa [#allocation6 + $0x1], 0 }
   0x4   :  { %13 = vsyncpa [#allocation4], 0 }
   0x5   :  { %15 = vsyncpa [#allocation4 + $0x1], 0  ;;  %s901_s9 = smov 0   ;;  %s903_s10 = smov 0  }
   0x6   :  { %s905_s11 = smov 0   ;;  %s907_s12 = smov 0  }
   0x7 LB: > { %s922_s13 = sadd.s32 4294967295, %s876_s12   ;;  %s650_s14 = sadd.s32 4294967294, %s876_s12   ;;  %s876_s12 = sphi %s907_s12, %s1251_s12   ;;  %s872_s11 = sphi %s905_s11, %s1250_s11   ;;  %s868_s10 = sphi %s903_s10, %s1249_s10   ;;  %s864_s9 = sphi %s901_s9, %s1248_s9  }
   0x8   : > { %s926_s15 = sadd.s32 1, %s876_s12   ;;  %s28_s16 = sadd.s32 1, %s872_s11 }
   0x9   : > { %s25_s17 = ssub.s32 %s876_s12, %s926_s15  ;;  %p35_p0 = scmp.ne.s32.totalorder %s872_s11, %s868_s10 }
   0xa   : > { %p26_p1 = scmp.eq.s32.totalorder %s25_s17, 0  ;;  %p36_p2 = scmp.eq.s32.totalorder %s876_s12, 0 }
   0xb   : > { %p41_p3 = scmp.ne.s32.totalorder %s868_s10, %s864_s9  ;;  %p42_p4 = scmp.eq.s32.totalorder %s922_s13, 0 }
   0xc   : > { %s938_s18 = scalar_select %p26_p1, %s872_s11, %s28_s16  }
   0xd   : > { %p940_p5 = por %p36_p2, %p35_p0  ;;  %p944_p6 = por %p42_p4, %p41_p3 }
   0xe   : > { %p91_p7 = scmp.eq.s32.totalorder %s922_s13, 1  ;;  %p97_p8 = scmp.eq.s32.totalorder %s650_s14, 1 }
   0xf   : > { %s1238_s20 = scalar_select %p944_p6, 1, 0 }
  0x10   : > { %p707_p10 = scmp.lt.s32.totalorder %s876_s12, 2  ;;  %p951_p11 = por %p91_p7, %p35_p0 }
  0x11   : > { %p955_p12 = por %p97_p8, %p41_p3  ;;  %s960_s23 = sand.u32 1, %s872_s11  }
  0x12   : > { %s1239_s21 = scalar_select %p951_p11, 1, 0 }
  0x13   : > { %s1240_s22 = scalar_select %p955_p12, 1, 0 }
  0x14   : > { %s687_s24 = sshll.u32 %s876_s12, 9  ;;  %s653_s25 = sshll.u32 %s960_s23, 6 }
  0x15   : > { %s969_s28 = scalar_lea.hbm %s1232_s0, %s687_s24  ;;  %s121_s29 = scalar_lea.vmem [#allocation2], %s653_s25 }
  0x16   : > { %s128_s30 = sshll.u32 %s121_s29, 4  ;;  %p975_p13 = pnand %p707_p10, %p940_p5  ;;  %s979_s30 = int_to_ptr.vmem [resolvable:$true] %s128_s30 }
  0x17   : > { %s118_s4 = scalar_lea.sflag [#allocation3], %s960_s23  ;;  %s746_s5 = scalar_lea.hbm %s969_s28, 1024 }
  0x18   : > { %p747_p1 = scmp.ne.s32.totalorder %s969_s28, %s746_s5  ;;  %p748_p2 = pneg %p975_p13 }
  0x19   : > { %s751_s8 = scalar_lea.hbm %s1232_s0, 2048  ;;  %p752_p5 = scmp.lt.u32.totalorder %s969_s28, %s1232_s0 }
  0x1a   : > { %p749_p3 = pnand %p748_p2, %p747_p1  ;;  %p753_p7 = scmp.lt.u32.totalorder %s751_s8, %s746_s5 }
  0x1b   : > { %p755_p10 = scmp.lt.u32.totalorder %s746_s5, %s969_s28 }
  0x1c   : > { %p750_p4 = pneg %p749_p3  ;;  %p754_p8 = por %p753_p7, %p752_p5 }
  0x1e   : > { %p756_p9 = por %p755_p10, %p754_p8 }
  0x20   : > { %p757_p0 = pnand %p756_p9, %p750_p4 }
  0x22   : > { %760 = shalt.err (!%p757_p0)
}
  0x23   : > { %s761_s17 = scalar_lea.vmem %s979_s30, 1024  ;;  %s878_s19 = smov [#allocation2]  }
  0x24   : > { %p762_p1 = scmp.ne.s32.totalorder %s979_s30, %s761_s17  ;;  %s766_s26 = sshll.u32 %s878_s19, 4  ;;  %s767_s26 = int_to_ptr.vmem [resolvable:$false] %s766_s26 }
  0x25   : > { %s768_s27 = scalar_lea.vmem %s767_s26, 2048  ;;  %p769_p11 = scmp.lt.s32.totalorder %s979_s30, %s767_s26 }
  0x26   : > { %p764_p3 = pnand %p762_p1, %p748_p2  ;;  %p770_p5 = scmp.lt.s32.totalorder %s768_s27, %s761_s17 }
  0x28   : > { %p765_p12 = pneg %p764_p3  ;;  %p771_p7 = por %p770_p5, %p769_p11 }
  0x2a   : > { %p772_p8 = pnand %p771_p7, %p765_p12 }
  0x2c   : > { %775 = shalt.err (!%p772_p8)
}
  0x2d   : > { %s879_s29 = smov 1024   ;;  %s880_s5 = smov 512  }
  0x2e   : > { %s881_s6 = smov 32   ;;  %p157_p9 = scmp.lt.s32.totalorder %s876_s12, 3 }
  0x2f   : > { %699 = dma.hbm_to_vmem [thread:$0]  (!%p975_p13), %s969_s28, 1024, %s979_s30, %s118_s4, %s879_s29, %s880_s5, %s881_s6  }
  0x30   : > { %s1019_s14 = scalar_lea.hbm %s1233_s1, %s687_s24  ;;  %p1242_p11 = scmp.ge.s32.totalorder %s876_s12, 1 }
  0x31   : > { %s142_s17 = scalar_lea.vmem [#allocation5], %s653_s25  ;;  %s139_s28 = scalar_lea.sflag [#allocation6], %s960_s23 }
  0x32   : > { %p1023_p12 = pnand %p1242_p11, %p157_p9  ;;  %s149_s19 = sshll.u32 %s142_s17, 4  ;;  %s1029_s19 = int_to_ptr.vmem [resolvable:$true] %s149_s19 }
  0x33   : > { %s776_s30 = scalar_lea.hbm %s1019_s14, 1024  ;;  %s781_s26 = scalar_lea.hbm %s1233_s1, 2048 }
  0x34   : > { %p777_p0 = scmp.ne.s32.totalorder %s1019_s14, %s776_s30  ;;  %p782_p1 = scmp.lt.u32.totalorder %s1019_s14, %s1233_s1 }
  0x35   : > { %p783_p3 = scmp.lt.u32.totalorder %s781_s26, %s776_s30  ;;  %p785_p7 = scmp.lt.u32.totalorder %s776_s30, %s1019_s14 }
  0x36   : > { %p779_p4 = pnand %p777_p0, %p748_p2 }
  0x37   : > { %p784_p5 = por %p783_p3, %p782_p1 }
  0x38   : > { %p780_p10 = pneg %p779_p4 }
  0x39   : > { %p786_p8 = por %p785_p7, %p784_p5 }
  0x3b   : > { %p787_p9 = pnand %p786_p8, %p780_p10 }
  0x3d   : > { %790 = shalt.err (!%p787_p9)
}
  0x3e   : > { %s791_s25 = scalar_lea.vmem %s1029_s19, 1024  ;;  %s882_s8 = smov [#allocation5]  }
  0x3f   : > { %p792_p11 = scmp.ne.s32.totalorder %s1029_s19, %s791_s25  ;;  %s796_s17 = sshll.u32 %s882_s8, 4  ;;  %s797_s17 = int_to_ptr.vmem [resolvable:$false] %s796_s17 }
  0x40   : > { %s798_s24 = scalar_lea.vmem %s797_s17, 2048  ;;  %p799_p6 = scmp.lt.s32.totalorder %s1029_s19, %s797_s17 }
  0x41   : > { %p794_p0 = pnand %p792_p11, %p748_p2  ;;  %p800_p1 = scmp.lt.s32.totalorder %s798_s24, %s791_s25 }
  0x43   : > { %p795_p4 = pneg %p794_p0  ;;  %p801_p3 = por %p800_p1, %p799_p6 }
  0x45   : > { %p802_p5 = pnand %p801_p3, %p795_p4 }
  0x47   : > { %805 = shalt.err (!%p802_p5)
}
  0x48   : > { %702 = dma.hbm_to_vmem [thread:$0]  (!%p975_p13), %s1019_s14, 1024, %s1029_s19, %s139_s28, %s879_s29, %s880_s5, %s881_s6  }
  0x49   : > { %161 = sbr.rel (%p1023_p12) target bundleno = 456 (0x1c8), region = 28  ;;  %s1063_s30 = sand.u32 (!%p1023_p12), 1, %s868_s10  }
  0x4a   : > { %s660_s4 = sshll.u32 (!%p1023_p12), %s1063_s30, 6  ;;  %s164_s26 = scalar_lea.sflag (!%p1023_p12), [#allocation3], %s1063_s30 }
  0x4b   : > { %s1067_s3 = scalar_lea.vmem (!%p1023_p12), [#allocation2], %s660_s4  ;;  %p1244_p6 = scmp.ne.s32.totalorder (!%p1023_p12), %s1238_s20, 0 }
  0x50   : > { %851 = dma.done.wait (%p1244_p6), %s164_s26, 1024  }
  0x51   : > { %853 = vsyncadd (%p1244_p6), %s164_s26, 4294966272  ;;  %s173_s23 = scalar_lea.sflag [#allocation6], %s1063_s30  ;;  %s1074_s29 = scalar_lea.vmem [#allocation5], %s660_s4 }
  0x52   : > { %855 = dma.done.wait (%p1244_p6), %s173_s23, 1024  }
  0x53   : > { %857 = vsyncadd (%p1244_p6), %s173_s23, 4294966272  ;;  %s662_s5 = sshll.u32 %s1063_s30, 4  ;;  %p663_p13 = scmp.ge.s32.totalorder %s922_s13, 1 }
  0x54   : > { %s1081_s6 = scalar_lea.vmem [#allocation7], %s662_s5  ;;  %v212_v0 = vld [vmem:[%s1074_s29] sm:$0xff] (!%p663_p13)  ;;  %v213_v1 = vld [vmem:[%s1074_s29 + $0x8] sm:$0xff] (!%p663_p13)  ;;  %v668_v2 = vld [vmem:[%s1074_s29 + $0x10] sm:$0xff] (!%p663_p13) }
  0x55   : > { %207 = sbr.rel (%p663_p13) target bundleno = 253 (0xfd), region = 40  ;;  %v669_v3 = vld [vmem:[%s1074_s29 + $0x18] sm:$0xff] (!%p663_p13)  ;;  %v262_v4 = vadd.f32 (!%p663_p13), %v668_v2, %v212_v0  ;;  %v208_v5 = vld [vmem:[%s1067_s3] sm:$0xff] (!%p663_p13)  ;;  %v209_v6 = vld [vmem:[%s1067_s3 + $0x8] sm:$0xff] (!%p663_p13)  ;;  %v1090_v7 = vmul.f32 (!%p663_p13), %v212_v0, %v212_v0  ;;  %v1092_v8 = vmul.f32 (!%p663_p13), %v213_v1, %v213_v1  ;;  %v1094_v9 = vmul.f32 (!%p663_p13), %v668_v2, %v668_v2 }
  0x56   : > { %v263_v10 = vadd.f32 (!%p663_p13), %v669_v3, %v213_v1  ;;  %v664_v11 = vld [vmem:[%s1067_s3 + $0x10] sm:$0xff] (!%p663_p13)  ;;  %v665_v12 = vld [vmem:[%s1067_s3 + $0x18] sm:$0xff] (!%p663_p13)  ;;  %v214_v13 = vld [vmem:[%s1074_s29 + $0x20] sm:$0xff] (!%p663_p13)  ;;  %v224_v14 = vmul.f32 (!%p663_p13), %v212_v0, %v208_v5  ;;  %v225_v15 = vmul.f32 (!%p663_p13), %v213_v1, %v209_v6  ;;  %v232_v16 = vmul.f32 (!%p663_p13), %v208_v5, %v208_v5 }
  0x57   : > { %v258_v17 = vadd.f32 (!%p663_p13), %v664_v11, %v208_v5  ;;  %v259_v18 = vadd.f32 (!%p663_p13), %v665_v12, %v209_v6  ;;  %v215_v19 = vld [vmem:[%s1074_s29 + $0x28] sm:$0xff] (!%p663_p13)  ;;  %v670_v20 = vld [vmem:[%s1074_s29 + $0x30] sm:$0xff] (!%p663_p13)  ;;  %v671_v21 = vld [vmem:[%s1074_s29 + $0x38] sm:$0xff] (!%p663_p13)  ;;  %v266_v22 = vmul.f32 (!%p663_p13), %v668_v2, %v664_v11  ;;  %v267_v23 = vmul.f32 (!%p663_p13), %v669_v3, %v665_v12 }
  0x58   : > { %v298_v24 = vadd.f32 (!%p663_p13), %v263_v10, %v262_v4  ;;  %v264_v25 = vadd.f32 (!%p663_p13), %v670_v20, %v214_v13  ;;  %v265_v26 = vadd.f32 (!%p663_p13), %v671_v21, %v215_v19  ;;  %v210_v27 = vld [vmem:[%s1067_s3 + $0x20] sm:$0xff] (!%p663_p13)  ;;  %v211_v28 = vld [vmem:[%s1067_s3 + $0x28] sm:$0xff] (!%p663_p13)  ;;  %v666_v29 = vld [vmem:[%s1067_s3 + $0x30] sm:$0xff] (!%p663_p13)  ;;  %v233_v30 = vmul.f32 (!%p663_p13), %v209_v6, %v209_v6 }
  0x59   : > { %v290_v31 = vadd.f32 (!%p663_p13), %v259_v18, %v258_v17  ;;  %v667_v32 = vld [vmem:[%s1067_s3 + $0x38] sm:$0xff] (!%p663_p13)  ;;  %v260_v33 = vadd.f32 (!%p663_p13), %v666_v29, %v210_v27  ;;  %v226_v34 = vmul.f32 (!%p663_p13), %v214_v13, %v210_v27  ;;  %v227_v35 = vmul.f32 (!%p663_p13), %v215_v19, %v211_v28 }
  0x5a   : > { %299 = vadd.xlane.f32.xlu1 (!%p663_p13), %v298_v24  ;;  %v301_v36 = vadd.f32 (!%p663_p13), %v265_v26, %v264_v25  ;;  %v261_v37 = vadd.f32 (!%p663_p13), %v667_v32, %v211_v28  ;;  %v268_v38 = vmul.f32 (!%p663_p13), %v670_v20, %v666_v29  ;;  %v269_v39 = vmul.f32 (!%p663_p13), %v671_v21, %v667_v32 }
  0x5b   : > { %291 = vadd.xlane.f32.xlu0 (!%p663_p13), %v290_v31  ;;  %v270_v40 = vadd.f32 (!%p663_p13), %v266_v22, %v224_v14  ;;  %v271_v41 = vadd.f32 (!%p663_p13), %v267_v23, %v225_v15  ;;  %v234_v42 = vmul.f32 (!%p663_p13), %v210_v27, %v210_v27  ;;  %v235_v43 = vmul.f32 (!%p663_p13), %v211_v28, %v211_v28 }
  0x5c   : > { %v293_v44 = vadd.f32 %v261_v37, %v260_v33  ;;  %v272_v45 = vadd.f32 %v268_v38, %v226_v34  ;;  %v273_v46 = vadd.f32 %v269_v39, %v227_v35  ;;  %v276_v47 = vmul.f32 %v666_v29, %v666_v29 }
  0x5d   : > { %v306_v48 = vadd.f32 %v271_v41, %v270_v40  ;;  %v277_v49 = vmul.f32 %v667_v32, %v667_v32  ;;  %v274_v50 = vmul.f32 %v664_v11, %v664_v11  ;;  %v275_v51 = vmul.f32 %v665_v12, %v665_v12 }
  0x5e   : > { %302 = vadd.xlane.f32.xlu1 %v301_v36  ;;  %v309_v52 = vadd.f32 %v273_v46, %v272_v45  ;;  %v280_v53 = vadd.f32 %v276_v47, %v234_v42  ;;  %v242_v54 = vmul.f32 %v214_v13, %v214_v13  ;;  %v243_v55 = vmul.f32 %v215_v19, %v215_v19 }
  0x5f   : > { %294 = vadd.xlane.f32.xlu0 %v293_v44  ;;  %v281_v56 = vadd.f32 %v277_v49, %v235_v43  ;;  %v278_v57 = vadd.f32 %v274_v50, %v232_v16  ;;  %v279_v58 = vadd.f32 %v275_v51, %v233_v30  ;;  %v284_v59 = vmul.f32 %v670_v20, %v670_v20 }
  0x60   : > { %v285_v60 = vmul.f32 %v671_v21, %v671_v21  ;;  %v283_v61 = vmul.f32 %v669_v3, %v669_v3  ;;  %v286_v2 = vadd.f32 %v1094_v9, %v1090_v7  ;;  %v330_v10 = vlaneseq }
  0x61   : > { %v317_v62 = vadd.f32 %v281_v56, %v280_v53  ;;  %v288_v63 = vadd.f32 %v284_v59, %v242_v54  ;;  %v314_v1 = vadd.f32 %v279_v58, %v278_v57 }
  0x62   : > { %310 = vadd.xlane.f32.xlu1 %v309_v52  ;;  %v289_v0 = vadd.f32 %v285_v60, %v243_v55  ;;  %v287_v4 = vadd.f32 %v283_v61, %v1092_v8  ;;  %v331_v12 = vand.u32 127, %v330_v10 }
  0x63   : > { %307 = vadd.xlane.f32.xlu0 %v306_v48 }
  0x64   : > { %v325_v5 = vadd.f32 %v289_v0, %v288_v63  ;;  %v322_v6 = vadd.f32 %v287_v4, %v286_v2  ;;  %vm335_vm0 = vcmp.eq.s32.totalorder %v331_v12, 1  ;;  %vm332_vm1 = vcmp.eq.s32.totalorder %v331_v12, 0 }
  0x65   : > { %vm340_vm2 = vcmp.eq.s32.totalorder %v331_v12, 2  ;;  %vm345_vm3 = vcmp.eq.s32.totalorder %v331_v12, 3  ;;  %vm350_vm4 = vcmp.eq.s32.totalorder %v331_v12, 4 }
  0x66   : > { %318 = vadd.xlane.f32.xlu1 %v317_v62 }
  0x67   : > { %315 = vadd.xlane.f32.xlu0 %v314_v1 }
  0x6a   : > { %326 = vadd.xlane.f32.xlu1 %v325_v5 }
  0x6b   : > { %323 = vadd.xlane.f32.xlu0 %v322_v6 }
  0xe7   : > { %v300_v11 = vpop.xlane.xlu1 %299 }
  0xe8   : > { %v292_v3 = vpop.xlane.xlu0 %291  ;;  %v336_v8 = vsel %vm335_vm0, %v300_v11, 0.0 }
  0xe9   : > { %v333_v17 = vsel %vm332_vm1, %v292_v3, 0.0 }
  0xea   : > { %v338_v22 = vadd.f32 %v336_v8, %v333_v17 }
  0xeb   : > { %v303_v13 = vpop.xlane.xlu1 %302 }
  0xec   : > { %v295_v14 = vpop.xlane.xlu0 %294  ;;  %v337_v16 = vsel %vm335_vm0, %v303_v13, 0.0 }
  0xed   : > { %v334_v7 = vsel %vm332_vm1, %v295_v14, 0.0 }
  0xee   : > { %v339_v19 = vadd.f32 %v337_v16, %v334_v7 }
  0xef   : > { %v311_v15 = vpop.xlane.xlu1 %310 }
  0xf0   : > { %v308_v9 = vpop.xlane.xlu0 %307  ;;  %v342_v18 = vsel %vm340_vm2, %v311_v15, 0.0 }
  0xf1   : > { %v341_v20 = vsel %vm340_vm2, %v308_v9, 0.0  ;;  %v344_v25 = vadd.f32 %v342_v18, %v339_v19 }
  0xf2   : > { %v343_v27 = vadd.f32 %v341_v20, %v338_v22 }
  0xf3   : > { %v319_v21 = vpop.xlane.xlu1 %318 }
  0xf4   : > { %v347_v23 = vsel %vm345_vm3, %v319_v21, 0.0  ;;  %v316_v24 = vpop.xlane.xlu0 %315 }
  0xf5   : > { %v346_v26 = vsel %vm345_vm3, %v316_v24, 0.0  ;;  %v349_v28 = vadd.f32 %v347_v23, %v344_v25 }
  0xf6   : > { %v348_v30 = vadd.f32 %v346_v26, %v343_v27 }
  0xf7   : > { %v327_v29 = vpop.xlane.xlu1 %326 }
  0xf8   : > { %v352_v31 = vsel %vm350_vm4, %v327_v29, 0.0  ;;  %v324_v32 = vpop.xlane.xlu0 %323 }
  0xf9   : > { %v354_v33 = vadd.f32 %v352_v31, %v349_v28  ;;  %v351_v34 = vsel %vm350_vm4, %v324_v32, 0.0 }
  0xfa   : > { %v353_v35 = vadd.f32 %v351_v34, %v348_v30 }
  0xfb   : > { %356 = vst [vmem:[%s1081_s6 + $0x8] sm:$0xff] %v354_v33 }
  0xfc   : > { %355 = vst [vmem:[%s1081_s6] sm:$0xff] %v353_v35 }
  0xfd PF: > { %p672_p2 = scmp.ne.s32.totalorder %s922_s13, 1 }
  0xfe   : > { %s673_s20 = sshll.u32 (!%p672_p2), %s922_s13, 9  ;;  %v371_v36 = vlaneseq (!%p672_p2)  ;;  %v365_v40 = vld [vmem:[%s1074_s29] sm:$0xff] (!%p672_p2)  ;;  %v678_v43 = vld [vmem:[%s1074_s29 + $0x10] sm:$0xff] (!%p672_p2)  ;;  %v366_v47 = vld [vmem:[%s1074_s29 + $0x8] sm:$0xff] (!%p672_p2) }
  0xff   : > { %360 = sbr.rel (%p672_p2) target bundleno = 430 (0x1ae), region = 44  ;;  %v374_v37 = vstv (!%p672_p2), %s673_s20  ;;  %s429_s14 = sadd.s32 (!%p672_p2), 256, %s673_s20  ;;  %v361_v45 = vld [vmem:[%s1067_s3] sm:$0xff] (!%p672_p2)  ;;  %v674_v46 = vld [vmem:[%s1067_s3 + $0x10] sm:$0xff] (!%p672_p2)  ;;  %v679_v48 = vld [vmem:[%s1074_s29 + $0x18] sm:$0xff] (!%p672_p2) }
 0x100   : > { %v1113_v38 = vand.u32 (!%p672_p2), 127, %v371_v36  ;;  %v430_v39 = vstv (!%p672_p2), %s429_s14  ;;  %v362_v51 = vld [vmem:[%s1067_s3 + $0x8] sm:$0xff] (!%p672_p2)  ;;  %v675_v52 = vld [vmem:[%s1067_s3 + $0x18] sm:$0xff] (!%p672_p2)  ;;  %v367_v53 = vld [vmem:[%s1074_s29 + $0x20] sm:$0xff] (!%p672_p2) }
 0x101   : > { %v368_v58 = vld [vmem:[%s1074_s29 + $0x28] sm:$0xff] (!%p672_p2)  ;;  %v680_v59 = vld [vmem:[%s1074_s29 + $0x30] sm:$0xff] (!%p672_p2)  ;;  %v681_v62 = vld [vmem:[%s1074_s29 + $0x38] sm:$0xff] (!%p672_p2) }
 0x102   : > { %v373_v41 = vadd.s32 (!%p672_p2), 128, %v1113_v38  ;;  %v375_v42 = vadd.s32 (!%p672_p2), %v374_v37, %v1113_v38  ;;  %v431_v44 = vadd.s32 (!%p672_p2), %v430_v39, %v1113_v38  ;;  %v363_v63 = vld [vmem:[%s1067_s3 + $0x20] sm:$0xff] (!%p672_p2)  ;;  %v364_v0 = vld [vmem:[%s1067_s3 + $0x28] sm:$0xff] (!%p672_p2)  ;;  %v676_v12 = vld [vmem:[%s1067_s3 + $0x30] sm:$0xff] (!%p672_p2)  ;;  %vm518_vm9 = vcmp.eq.s32.totalorder (!%p672_p2), %v1113_v38, 1 }
 0x103   : > { %v677_v13 = vld [vmem:[%s1067_s3 + $0x38] sm:$0xff] (!%p672_p2)  ;;  %vm515_vm10 = vcmp.eq.s32.totalorder (!%p672_p2), %v1113_v38, 0  ;;  %vm523_vm11 = vcmp.eq.s32.totalorder (!%p672_p2), %v1113_v38, 2  ;;  %vm528_vm12 = vcmp.eq.s32.totalorder (!%p672_p2), %v1113_v38, 3  ;;  %vm533_vm13 = vcmp.eq.s32.totalorder (!%p672_p2), %v1113_v38, 4 }
 0x104   : > { %v376_v49 = vadd.s32 (!%p672_p2), %v374_v37, %v373_v41  ;;  %vm377_vm5 = vcmp.lt.s32.totalorder (!%p672_p2), %v375_v42, 1000  ;;  %v432_v50 = vadd.s32 (!%p672_p2), %v430_v39, %v373_v41  ;;  %vm433_vm6 = vcmp.lt.s32.totalorder (!%p672_p2), %v431_v44, 1000 }
 0x105   : > { %v1128_v54 = vsel (!%p672_p2), %vm377_vm5, %v365_v40, 0.0  ;;  %v1131_v55 = vsel (!%p672_p2), %vm433_vm6, %v678_v43, 0.0  ;;  %v379_v56 = vsel (!%p672_p2), %vm377_vm5, %v361_v45, 0.0  ;;  %v435_v57 = vsel (!%p672_p2), %vm433_vm6, %v674_v46, 0.0 }
 0x106   : > { %vm378_vm7 = vcmp.lt.s32.totalorder %v376_v49, 1000  ;;  %vm434_vm8 = vcmp.lt.s32.totalorder %v432_v50, 1000  ;;  %v447_v60 = vadd.f32 %v1131_v55, %v1128_v54  ;;  %v443_v61 = vadd.f32 %v435_v57, %v379_v56 }
 0x107   : > { %v1143_v1 = vsel %vm378_vm7, %v366_v47, 0.0  ;;  %v1146_v2 = vsel %vm434_vm8, %v679_v48, 0.0  ;;  %v380_v4 = vsel %vm378_vm7, %v362_v51, 0.0  ;;  %v436_v5 = vsel %vm434_vm8, %v675_v52, 0.0 }
 0x108   : > { %v448_v6 = vadd.f32 %v1146_v2, %v1143_v1  ;;  %v444_v10 = vadd.f32 %v436_v5, %v380_v4  ;;  %v385_v11 = vsel %vm377_vm5, %v367_v53, 0.0  ;;  %v386_v3 = vsel %vm378_vm7, %v368_v58, 0.0 }
 0x109   : > { %v441_v14 = vsel %vm433_vm6, %v680_v59, 0.0  ;;  %v442_v15 = vsel %vm434_vm8, %v681_v62, 0.0  ;;  %v381_v16 = vsel %vm377_vm5, %v363_v63, 0.0  ;;  %v382_v7 = vsel %vm378_vm7, %v364_v0, 0.0 }
 0x10a   : > { %v483_v9 = vadd.f32 %v448_v6, %v447_v60  ;;  %v475_v8 = vadd.f32 %v444_v10, %v443_v61  ;;  %v449_v17 = vadd.f32 %v441_v14, %v385_v11  ;;  %v450_v18 = vadd.f32 %v442_v15, %v386_v3 }
 0x10b   : > { %v437_v19 = vsel %vm433_vm6, %v676_v12, 0.0  ;;  %v438_v20 = vsel %vm434_vm8, %v677_v13, 0.0  ;;  %v397_v21 = vmul.f32 %v385_v11, %v381_v16  ;;  %v398_v22 = vmul.f32 %v386_v3, %v382_v7 }
 0x10c   : > { %484 = vadd.xlane.f32.xlu1 %v483_v9  ;;  %476 = vadd.xlane.f32.xlu0 %v475_v8  ;;  %v486_v23 = vadd.f32 %v450_v18, %v449_v17  ;;  %v445_v24 = vadd.f32 %v437_v19, %v381_v16  ;;  %v446_v25 = vadd.f32 %v438_v20, %v382_v7 }
 0x10d   : > { %v453_v26 = vmul.f32 %v441_v14, %v437_v19  ;;  %v454_v27 = vmul.f32 %v442_v15, %v438_v20  ;;  %v395_v28 = vmul.f32 %v1128_v54, %v379_v56  ;;  %v396_v29 = vmul.f32 %v1143_v1, %v380_v4 }
 0x10e   : > { %v478_v30 = vadd.f32 %v446_v25, %v445_v24  ;;  %v451_v31 = vmul.f32 %v1131_v55, %v435_v57  ;;  %v452_v32 = vmul.f32 %v1146_v2, %v436_v5  ;;  %v405_v33 = vmul.f32 %v381_v16, %v381_v16 }
 0x10f   : > { %v457_v34 = vadd.f32 %v453_v26, %v397_v21  ;;  %v458_v35 = vadd.f32 %v454_v27, %v398_v22  ;;  %v406_v36 = vmul.f32 %v382_v7, %v382_v7  ;;  %v461_v37 = vmul.f32 %v437_v19, %v437_v19 }
 0x110   : > { %487 = vadd.xlane.f32.xlu1 %v486_v23  ;;  %479 = vadd.xlane.f32.xlu0 %v478_v30  ;;  %v455_v39 = vadd.f32 %v451_v31, %v395_v28  ;;  %v456_v40 = vadd.f32 %v452_v32, %v396_v29  ;;  %v462_v41 = vmul.f32 %v438_v20, %v438_v20 }
 0x111   : > { %v494_v42 = vadd.f32 %v458_v35, %v457_v34  ;;  %v465_v43 = vadd.f32 %v461_v37, %v405_v33  ;;  %v403_v44 = vmul.f32 %v379_v56, %v379_v56  ;;  %v404_v45 = vmul.f32 %v380_v4, %v380_v4 }
 0x112   : > { %v491_v46 = vadd.f32 %v456_v40, %v455_v39  ;;  %v466_v47 = vadd.f32 %v462_v41, %v406_v36  ;;  %v459_v48 = vmul.f32 %v435_v57, %v435_v57  ;;  %v460_v49 = vmul.f32 %v436_v5, %v436_v5 }
 0x113   : > { %v413_v50 = vmul.f32 %v385_v11, %v385_v11  ;;  %v414_v51 = vmul.f32 %v386_v3, %v386_v3  ;;  %v469_v52 = vmul.f32 %v441_v14, %v441_v14  ;;  %v470_v53 = vmul.f32 %v442_v15, %v442_v15 }
 0x114   : > { %495 = vadd.xlane.f32.xlu1 %v494_v42  ;;  %492 = vadd.xlane.f32.xlu0 %v491_v46  ;;  %v502_v58 = vadd.f32 %v466_v47, %v465_v43  ;;  %v463_v59 = vadd.f32 %v459_v48, %v403_v44  ;;  %v464_v60 = vadd.f32 %v460_v49, %v404_v45 }
 0x115   : > { %v473_v61 = vadd.f32 %v469_v52, %v413_v50  ;;  %v474_v62 = vadd.f32 %v470_v53, %v414_v51  ;;  %v411_v63 = vmul.f32 %v1128_v54, %v1128_v54  ;;  %v412_v56 = vmul.f32 %v1143_v1, %v1143_v1 }
 0x116   : > { %v499_v0 = vadd.f32 %v464_v60, %v463_v59  ;;  %v467_v57 = vmul.f32 %v1131_v55, %v1131_v55  ;;  %v468_v4 = vmul.f32 %v1146_v2, %v1146_v2 }
 0x117   : > { %v510_v5 = vadd.f32 %v474_v62, %v473_v61 }
 0x118   : > { %503 = vadd.xlane.f32.xlu1 %v502_v58  ;;  %500 = vadd.xlane.f32.xlu0 %v499_v0  ;;  %v471_v6 = vadd.f32 %v467_v57, %v411_v63  ;;  %v472_v10 = vadd.f32 %v468_v4, %v412_v56 }
 0x11a   : > { %v507_v11 = vadd.f32 %v472_v10, %v471_v6 }
 0x11c   : > { %511 = vadd.xlane.f32.xlu1 %v510_v5  ;;  %508 = vadd.xlane.f32.xlu0 %v507_v11 }
 0x199   : > { %v485_v3 = vpop.xlane.xlu1 %484  ;;  %v477_v54 = vpop.xlane.xlu0 %476 }
 0x19a   : > { %v519_v2 = vsel %vm518_vm9, %v485_v3, 0.0  ;;  %v516_v14 = vsel %vm515_vm10, %v477_v54, 0.0 }
 0x19b   : > { %v521_v8 = vadd.f32 %v519_v2, %v516_v14 }
 0x19d   : > { %v488_v12 = vpop.xlane.xlu1 %487  ;;  %v480_v13 = vpop.xlane.xlu0 %479 }
 0x19e   : > { %v520_v15 = vsel %vm518_vm9, %v488_v12, 0.0  ;;  %v517_v16 = vsel %vm515_vm10, %v480_v13, 0.0 }
 0x19f   : > { %v522_v17 = vadd.f32 %v520_v15, %v517_v16 }
 0x1a1   : > { %v496_v55 = vpop.xlane.xlu1 %495  ;;  %v493_v1 = vpop.xlane.xlu0 %492 }
 0x1a2   : > { %v525_v7 = vsel %vm523_vm11, %v496_v55, 0.0  ;;  %v524_v9 = vsel %vm523_vm11, %v493_v1, 0.0 }
 0x1a3   : > { %v527_v22 = vadd.f32 %v525_v7, %v522_v17  ;;  %v526_v23 = vadd.f32 %v524_v9, %v521_v8 }
 0x1a5   : > { %v504_v18 = vpop.xlane.xlu1 %503  ;;  %v501_v19 = vpop.xlane.xlu0 %500 }
 0x1a6   : > { %v530_v20 = vsel %vm528_vm12, %v504_v18, 0.0  ;;  %v529_v21 = vsel %vm528_vm12, %v501_v19, 0.0 }
 0x1a7   : > { %v532_v24 = vadd.f32 %v530_v20, %v527_v22  ;;  %v531_v25 = vadd.f32 %v529_v21, %v526_v23 }
 0x1a9   : > { %v512_v26 = vpop.xlane.xlu1 %511  ;;  %v509_v27 = vpop.xlane.xlu0 %508 }
 0x1aa   : > { %v535_v28 = vsel %vm533_vm13, %v512_v26, 0.0  ;;  %v534_v29 = vsel %vm533_vm13, %v509_v27, 0.0 }
 0x1ab   : > { %v537_v30 = vadd.f32 %v535_v28, %v532_v24  ;;  %v536_v31 = vadd.f32 %v534_v29, %v531_v25 }
 0x1ad   : > { %539 = vst [vmem:[%s1081_s6 + $0x8] sm:$0xff] %v537_v30  ;;  %538 = vst [vmem:[%s1081_s6] sm:$0xff] %v536_v31 }
 0x1ae PF: > { %s689_s16 = sshll.u32 %s922_s13, 8  ;;  %s554_s7 = sshll.u32 %s1081_s6, 4  ;;  %s1188_s7 = int_to_ptr.vmem [resolvable:$true] %s554_s7 }
 0x1af   : > { %s1185_s27 = scalar_lea.hbm %s1234_s2, %s689_s16  ;;  %s541_s25 = scalar_lea.sflag [#allocation4], %s1063_s30 }
 0x1b0   : > { %s806_s8 = scalar_lea.vmem %s1188_s7, 256  ;;  %p1245_p10 = scmp.ne.s32.totalorder %s1239_s21, 0 }
 0x1b1   : > { %p807_p12 = scmp.ne.s32.totalorder %s1188_s7, %s806_s8  ;;  %s883_s17 = smov [#allocation7]  }
 0x1b2   : > { %s810_s24 = sshll.u32 %s883_s17, 4  ;;  %s811_s24 = int_to_ptr.vmem [resolvable:$false] %s810_s24 }
 0x1b3   : > { %p808_p7 = pnand %p807_p12, %p1245_p10  ;;  %s812_s13 = scalar_lea.vmem %s811_s24, 512 }
 0x1b4   : > { %p813_p9 = scmp.lt.s32.totalorder %s1188_s7, %s811_s24  ;;  %p814_p11 = scmp.lt.s32.totalorder %s812_s13, %s806_s8 }
 0x1b5   : > { %p809_p8 = pneg %p808_p7 }
 0x1b6   : > { %p815_p0 = por %p814_p11, %p813_p9 }
 0x1b8   : > { %p816_p4 = pnand %p815_p0, %p809_p8 }
 0x1ba   : > { %819 = shalt.err (!%p816_p4)
}
 0x1bb   : > { %s820_s4 = scalar_lea.hbm %s1185_s27, 256  ;;  %s824_s23 = scalar_lea.hbm %s1234_s2, 512 }
 0x1bc   : > { %p821_p1 = scmp.ne.s32.totalorder %s1185_s27, %s820_s4  ;;  %p825_p6 = scmp.lt.u32.totalorder %s1185_s27, %s1234_s2 }
 0x1bd   : > { %p826_p13 = scmp.lt.u32.totalorder %s824_s23, %s820_s4  ;;  %p828_p12 = scmp.lt.u32.totalorder %s820_s4, %s1185_s27 }
 0x1be   : > { %p822_p3 = pnand %p821_p1, %p1245_p10 }
 0x1bf   : > { %p827_p2 = por %p826_p13, %p825_p6 }
 0x1c0   : > { %p823_p5 = pneg %p822_p3 }
 0x1c1   : > { %p829_p7 = por %p828_p12, %p827_p2 }
 0x1c3   : > { %p830_p8 = pnand %p829_p7, %p823_p5 }
 0x1c5   : > { %833 = shalt.err (!%p830_p8)
}
 0x1c6   : > { %s884_s6 = smov 128   ;;  %s885_s20 = smov 8  }
 0x1c7   : > { %694 = dma.vmem_to_hbm [thread:$0]  (%p1245_p10), %s1188_s7, 256, %s1185_s27, %s541_s25, %s884_s6, %s884_s6, %s885_s20  }
 0x1c8 PF: > { %s569_s14 = sand.u32 1, %s864_s9   ;;  %p1246_p9 = scmp.ne.s32.totalorder %s1240_s22, 0 }
 0x1c9   : > { %p1247_p11 = scmp.ge.s32.totalorder %s876_s12, 2  ;;  %s570_s16 = scalar_lea.sflag [#allocation4], %s569_s14 }
 0x1cb   : > { %p704_p0 = pnand %p1247_p11, %p1246_p9 }
 0x1cd   : > { %859 = dma.done.wait (!%p704_p0), %s570_s16, 256  }
 0x1ce   : > { %861 = vsyncadd (!%p704_p0), %s570_s16, 4294967040  ;;  %p18_p4 = scmp.ge.s32.totalorder %s926_s15, 4   ;;  %s1248_s9 = smov %s868_s10 }
 0x1cf   : > { %s1249_s10 = smov %s872_s11  ;;  %s1250_s11 = smov %s938_s18 }
 0x1d0   : > { %s1251_s12 = smov %s926_s15  ;;  %20 = sbr.rel (!%p18_p4) target bundleno = 7 (0x7), region = 98 }
 0x1d7   :  { %575 = vsyncpa [#allocation3], 1 }
 0x1d8   :  { %577 = vsyncpa [#allocation3 + $0x1], 1 }
 0x1d9   :  { %578 = vsyncpa [#allocation6], 1 }
 0x1da   :  { %580 = vsyncpa [#allocation6 + $0x1], 1 }
 0x1db   :  { %581 = vsyncpa [#allocation4], 1 }
 0x1dc   :  { %583 = vsyncpa [#allocation4 + $0x1], 1 }

</bundles_post_ra>
